<compile_context>
chip_gen: v5e
topology: v5e:2x2
jax: 0.10.0
libtpu: 0.0.40
codegen_flags: <defaults>
</compile_context>

<pallas_src>
import functools

import jax
import jax.numpy as jnp
from jax.experimental import pallas as pl
from jax.experimental.pallas import tpu as pltpu


_LANE = 128       # vreg lane width: every feature dim is zero-padded to this
_SUBLANE = 8      # vreg sublane count: batch is padded to a multiple of this
_DEFAULT_VMEM_CAP = 64 << 20   # conservative (v7x per-TC) if the HW query fails


def _round_up(x, m):
    return ((x + m - 1) // m) * m


def _vmem_capacity_bytes():
    try:
        info = pltpu.get_tpu_info()
        cap = getattr(info, "vmem_capacity_bytes", None)
        if cap:
            return int(cap)
    except Exception:
        pass
    return _DEFAULT_VMEM_CAP


def _chip_config(vmem_cap):
    """Batch-tiling policy derived from VMEM capacity (proxy for chip gen).

    v7x-like (64 MiB VMEM, 2 TensorCores): grid early with modest 128/256-row
    tiles so there are >=2 "parallel" steps for the two TCs while respecting
    the smaller VMEM.  v5e/v6e-like (128 MiB, 1 TC): the grid is a serial
    loop, so prefer few big 1024-row tiles (measured ~85% of HBM roofline vs
    ~63% at 256-row tiles).
    """
    if vmem_cap <= (80 << 20):
        return {"gridless_max": 248, "tile_small": 128, "tile_large": 256}
    return {"gridless_max": 1024, "tile_small": 1024, "tile_large": 1024}


def _apply_activation(h, activation):
    if activation == "relu":
        return jnp.maximum(h, 0.0)
    if activation == "sigmoid":
        return jax.nn.sigmoid(h)
    if activation == "tanh":
        return jnp.tanh(h)
    raise ValueError(f"unknown activation: {activation}")


def _mlp_kernel(*refs, num_layers, activation, activate_last):
    """Fused MLP chain.  refs = (x, w0, b0, ..., w_{L-1}, b_{L-1}, out).

    x: (rows, Kp) f32; wi: (Kp_i, Np_i) pre-transposed, zero-padded, bf16 (or
    f32); bi: (1, Np_i) f32; out: (rows, Np_last) f32.  The layer chain is
    unrolled at trace time; intermediate activations stay in vregs / VMEM and
    never touch HBM.  Zero-padded weight rows guarantee that garbage in padded
    activation lanes (e.g. sigmoid(0)=0.5) contributes nothing downstream.
    """
    x_ref = refs[0]
    out_ref = refs[-1]
    h = x_ref[...]
    for i in range(num_layers):
        w_ref = refs[1 + 2 * i]
        b_ref = refs[2 + 2 * i]
        # Cast the activation operand to the (bf16) weight dtype right before
        # the MXU matmul; accumulate in f32 via preferred_element_type.
        h = jnp.dot(h.astype(w_ref.dtype), w_ref[...],
                    preferred_element_type=jnp.float32) + b_ref[...]
        if i < num_layers - 1 or activate_last:
            h = _apply_activation(h, activation)   # f32 VPU/EUP math
    out_ref[...] = h.astype(out_ref.dtype)


def _mlp_pallas_call(xp, layer_params, activation, activate_last, cfg, vmem_cap):
    """xp: (Bp, Kp) f32 padded input.  Returns padded (Bp, Np_last) f32."""
    Bp, Kp = xp.shape
    widths = [int(w.shape[1]) for w, _ in layer_params]
    Np = widths[-1]
    num_layers = len(layer_params)

    inputs = [xp]
    param_bytes = 0
    for w, b in layer_params:
        inputs.append(w)
        inputs.append(b)
        param_bytes += int(w.size) * w.dtype.itemsize + int(b.size) * b.dtype.itemsize

    kernel = functools.partial(_mlp_kernel, num_layers=num_layers,
                               activation=activation, activate_last=activate_last)
    out_shape = jax.ShapeDtypeStruct((Bp, Np), jnp.float32)

    gridded = Bp > cfg["gridless_max"]
    if gridded:
        # Ensure >=2 grid steps at moderate batch (matters for v7x's 2 TCs).
        tile = cfg["tile_small"] if Bp < 2 * cfg["tile_large"] else cfg["tile_large"]
        rows, n_buf = tile, 2          # x / out batch tiles are double-buffered
    else:
        rows, n_buf = Bp, 1

    # Explicit scoped-VMEM budget: resident weights + streamed x/out tiles +
    # headroom (spill scratch), capped per generation.  The default scoped
    # limit (16 MiB v5e / 32 MiB v6e,v7x) is far below physical VMEM.
    io_bytes = n_buf * rows * (Kp + max(widths) + Np) * 4
    limit = param_bytes + io_bytes + (8 << 20)
    limit = int(min(max(limit, 16 << 20), min(int(vmem_cap * 0.85), 100 << 20)))

    if not gridded:
        # Small batch: no grid at all -- one launch, everything resident in
        # VMEM, zero pipeline bookkeeping.
        return pl.pallas_call(
            kernel,
            out_shape=out_shape,
            compiler_params=pltpu.CompilerParams(vmem_limit_bytes=limit),
        )(*inputs)

    # Large batch: tile only the batch axis.  pl.cdiv allows a ragged last
    # tile (rows are independent, so garbage rows in the boundary block are
    # computed and then dropped by the masked boundary store) -- no rounding
    # the batch up to a full tile.  Weights / biases use whole-array VMEM
    # specs: constant-index residents copied in once, no double buffering.
    # NOTE: with 1024-row tiles the live activation spills vregs -> VMEM; at
    # large batch this kernel is HBM-bound so that is fine (only shrink the
    # tile if a bundle dump shows ld/st slot_util saturating).
    grid = (pl.cdiv(Bp, tile),)
    in_specs = [pl.BlockSpec((tile, Kp), lambda i: (i, 0))]
    for _ in layer_params:
        in_specs.append(pl.BlockSpec(memory_space=pltpu.MemorySpace.VMEM))
        in_specs.append(pl.BlockSpec(memory_space=pltpu.MemorySpace.VMEM))
    out_specs = pl.BlockSpec((tile, Np), lambda i: (i, 0))
    return pl.pallas_call(
        kernel,
        out_shape=out_shape,
        grid=grid,
        in_specs=in_specs,
        out_specs=out_specs,
        compiler_params=pltpu.CompilerParams(
            dimension_semantics=("parallel",),     # shards across v7x's 2 TCs
            vmem_limit_bytes=limit),
    )(*inputs)


def _forward_impl(padded_params, x, *, activation, out_features, use_fused,
                  cfg, vmem_cap):
    B, K = x.shape
    Kp = padded_params[0][0].shape[0]
    Bp = max(_round_up(B, _SUBLANE), _SUBLANE)   # pad batch only to sublane
    xp = x.astype(jnp.float32)
    if Bp != B or Kp != K:
        xp = jnp.pad(xp, ((0, Bp - B), (0, Kp - K)))

    if use_fused:
        y = _mlp_pallas_call(xp, padded_params, activation, False, cfg, vmem_cap)
    else:
        # Weights too large to keep every layer resident in VMEM at once:
        # run layer-by-layer (intermediates round-trip HBM, weight DMA
        # pipelines behind the batch grid).
        # TODO(synk): K/N-tile a single layer whose weight alone exceeds VMEM.
        h = xp
        for i, (w, b) in enumerate(padded_params):
            last = i == len(padded_params) - 1
            h = _mlp_pallas_call(h, [(w, b)], activation, not last, cfg, vmem_cap)
        y = h

    # TODO(synk): for huge batch with output_size=1 the padded (Bp, 128)
    # writeback plus this slice is ~2x the useful output HBM traffic; a
    # dedicated narrow-head epilogue could trim it (in-kernel store stays
    # lane-dense, which is the right trade for masked-vst avoidance).
    return y[:B, :out_features]


class NeuralNetworkPallas:
    """Pallas port of `NueralNetwork`: MLP of nn.Linear layers with a shared
    activation on all hidden layers and a plain linear output layer."""

    def __init__(self, input_size, output_size, hidden_layer_sizes,
                 activation_function, key, matmul_dtype=jnp.bfloat16):
        if activation_function not in ("relu", "sigmoid", "tanh"):
            raise ValueError(f"unknown activation: {activation_function}")
        self.input_size = input_size
        self.output_size = output_size
        self.hidden_layer_sizes = list(hidden_layer_sizes)
        self.activation_function = activation_function

        sizes = [input_size] + self.hidden_layer_sizes + [output_size]
        self.params = []         # unpadded f32, (in, out) layout: y = x @ W + b
        self.padded_params = []  # zero-padded to 128-lane tiles; weights bf16
        for fan_in, fan_out in zip(sizes[:-1], sizes[1:]):
            key, kw, kb = jax.random.split(key, 3)
            # torch.nn.Linear default init: U(-1/sqrt(fan_in), 1/sqrt(fan_in)).
            bound = 1.0 / (fan_in ** 0.5)
            w = jax.random.uniform(kw, (fan_in, fan_out), jnp.float32,
                                   minval=-bound, maxval=bound)
            b = jax.random.uniform(kb, (fan_out,), jnp.float32,
                                   minval=-bound, maxval=bound)
            self.params.append((w, b))

            kp = _round_up(fan_in, _LANE)
            npad = _round_up(fan_out, _LANE)
            wp = jnp.zeros((kp, npad), jnp.float32).at[:fan_in, :fan_out].set(w)
            bp = jnp.zeros((1, npad), jnp.float32).at[0, :fan_out].set(b)
            # bf16 MXU operands, f32 accumulation inside the kernel; bias
            # stays f32 (added post-accumulation).
            self.padded_params.append((wp.astype(matmul_dtype), bp))

        vmem_cap = _vmem_capacity_bytes()
        cfg = _chip_config(vmem_cap)
        param_bytes = sum(int(w.size) * w.dtype.itemsize +
                          int(b.size) * b.dtype.itemsize
                          for w, b in self.padded_params)
        # Fully-resident fused path only while all weights fit comfortably in
        # scoped VMEM; otherwise fall back to layer-by-layer pallas_calls.
        use_fused = param_bytes <= int(0.45 * vmem_cap)

        self._forward = jax.jit(functools.partial(
            _forward_impl,
            activation=self.activation_function,
            out_features=self.output_size,
            use_fused=use_fused,
            cfg=cfg,
            vmem_cap=vmem_cap))

    def __call__(self, x):
        return self._forward(self.padded_params, x)


if __name__ == "__main__":
    key = jax.random.PRNGKey(0)
    key, k_model, k_x, k_xl = jax.random.split(key, 4)

    # Small shapes consistent with the regression module:
    # batch=8, input_size=16, hidden_layer_sizes=[32, 32], output_size=1.
    batch, input_size, output_size = 8, 16, 1
    hidden_layer_sizes = [32, 32]

    x = jax.random.normal(k_x, (batch, input_size), jnp.float32)

    def reference(params, xin, activation):
        h = xin
        for w, b in params[:-1]:
            h = jnp.dot(h, w, precision=jax.lax.Precision.HIGHEST) + b
            h = _apply_activation(h, activation)
        w, b = params[-1]
        return jnp.dot(h, w, precision=jax.lax.Precision.HIGHEST) + b

    # 1) f32 matmul path: tight tolerance checks the padding / plumbing.
    model_f32 = NeuralNetworkPallas(input_size, output_size, hidden_layer_sizes,
                                    "relu", key=k_model,
                                    matmul_dtype=jnp.float32)
    out = jax.block_until_ready(model_f32(x))
    ref = reference(model_f32.params, x, "relu")
    assert out.shape == (batch, output_size), out.shape
    assert jnp.allclose(out, ref, atol=1e-4, rtol=1e-4), "f32 path mismatch"

    # 2) Default bf16-weight path.  sigmoid additionally verifies that the
    #    zero-padded lanes (sigmoid(0)=0.5 garbage) never leak into outputs.
    for act in ("relu", "sigmoid"):
        model = NeuralNetworkPallas(input_size, output_size,
                                    hidden_layer_sizes, act, key=k_model)
        out = jax.block_until_ready(model(x))
        ref = reference(model.params, x, act)
        assert out.shape == (batch, output_size), out.shape
        assert jnp.allclose(out, ref, atol=3e-2, rtol=3e-2), f"bf16 mismatch ({act})"

    # 3) Large ragged batch: exercises the batch-tiled "parallel" grid path
    #    (cdiv grid + ragged last tile) on whichever chip generation runs it.
    xl = jax.random.normal(k_xl, (2080, input_size), jnp.float32)
    model = NeuralNetworkPallas(input_size, output_size, hidden_layer_sizes,
                                "tanh", key=k_model)
    out_l = jax.block_until_ready(model(xl))
    ref_l = reference(model.params, xl, "tanh")
    assert out_l.shape == (2080, output_size), out_l.shape
    assert jnp.allclose(out_l, ref_l, atol=3e-2, rtol=3e-2), "gridded path mismatch"

    print("KERNEL_OK")
</pallas_src>

<mosaic_0001>
module attributes {stable_mosaic.version = 11 : i64} {
  func.func @_mlp_kernel(%arg0: memref<8x128xf32, #tpu.memory_space<vmem>>, %arg1: memref<128x128xf32, #tpu.memory_space<vmem>>, %arg2: memref<1x128xf32, #tpu.memory_space<vmem>>, %arg3: memref<128x128xf32, #tpu.memory_space<vmem>>, %arg4: memref<1x128xf32, #tpu.memory_space<vmem>>, %arg5: memref<128x128xf32, #tpu.memory_space<vmem>>, %arg6: memref<1x128xf32, #tpu.memory_space<vmem>>, %arg7: memref<8x128xf32, #tpu.memory_space<vmem>>) attributes {dimension_semantics = [], scalar_prefetch = 0 : i64, scratch_operands = 0 : i64, tpu.core_type = #tpu.core_type<tc>} {
    %c0 = arith.constant 0 : index
    %c0_0 = arith.constant 0 : index
    %0 = vector.load %arg0[%c0, %c0_0] : memref<8x128xf32, #tpu.memory_space<vmem>>, vector<8x128xf32>
    %c0_1 = arith.constant 0 : index
    %c0_2 = arith.constant 0 : index
    %1 = vector.load %arg1[%c0_1, %c0_2] : memref<128x128xf32, #tpu.memory_space<vmem>>, vector<128x128xf32>
    %cst = arith.constant dense<0.000000e+00> : vector<8x128xf32>
    %2 = tpu.matmul %0, %1, %cst {dimension_numbers = #tpu.dot_dimension_numbers<[1], [0], [0], [1], [0, 0, 1, 1], [], []>} : vector<8x128xf32>, vector<128x128xf32>, vector<8x128xf32> -> vector<8x128xf32>
    %c0_3 = arith.constant 0 : index
    %c0_4 = arith.constant 0 : index
    %3 = vector.load %arg2[%c0_3, %c0_4] : memref<1x128xf32, #tpu.memory_space<vmem>>, vector<1x128xf32>
    %4 = vector.broadcast %3 : vector<1x128xf32> to vector<8x128xf32>
    %5 = arith.addf %2, %4 : vector<8x128xf32>
    %cst_5 = arith.constant 0.000000e+00 : f32
    %6 = vector.broadcast %cst_5 : f32 to vector<8x128xf32>
    %7 = arith.maximumf %5, %6 : vector<8x128xf32>
    %c0_6 = arith.constant 0 : index
    %c0_7 = arith.constant 0 : index
    %8 = vector.load %arg3[%c0_6, %c0_7] : memref<128x128xf32, #tpu.memory_space<vmem>>, vector<128x128xf32>
    %cst_8 = arith.constant dense<0.000000e+00> : vector<8x128xf32>
    %9 = tpu.matmul %7, %8, %cst_8 {dimension_numbers = #tpu.dot_dimension_numbers<[1], [0], [0], [1], [0, 0, 1, 1], [], []>} : vector<8x128xf32>, vector<128x128xf32>, vector<8x128xf32> -> vector<8x128xf32>
    %c0_9 = arith.constant 0 : index
    %c0_10 = arith.constant 0 : index
    %10 = vector.load %arg4[%c0_9, %c0_10] : memref<1x128xf32, #tpu.memory_space<vmem>>, vector<1x128xf32>
    %11 = vector.broadcast %10 : vector<1x128xf32> to vector<8x128xf32>
    %12 = arith.addf %9, %11 : vector<8x128xf32>
    %cst_11 = arith.constant 0.000000e+00 : f32
    %13 = vector.broadcast %cst_11 : f32 to vector<8x128xf32>
    %14 = arith.maximumf %12, %13 : vector<8x128xf32>
    %c0_12 = arith.constant 0 : index
    %c0_13 = arith.constant 0 : index
    %15 = vector.load %arg5[%c0_12, %c0_13] : memref<128x128xf32, #tpu.memory_space<vmem>>, vector<128x128xf32>
    %cst_14 = arith.constant dense<0.000000e+00> : vector<8x128xf32>
    %16 = tpu.matmul %14, %15, %cst_14 {dimension_numbers = #tpu.dot_dimension_numbers<[1], [0], [0], [1], [0, 0, 1, 1], [], []>} : vector<8x128xf32>, vector<128x128xf32>, vector<8x128xf32> -> vector<8x128xf32>
    %c0_15 = arith.constant 0 : index
    %c0_16 = arith.constant 0 : index
    %17 = vector.load %arg6[%c0_15, %c0_16] : memref<1x128xf32, #tpu.memory_space<vmem>>, vector<1x128xf32>
    %18 = vector.broadcast %17 : vector<1x128xf32> to vector<8x128xf32>
    %19 = arith.addf %16, %18 : vector<8x128xf32>
    %c0_17 = arith.constant 0 : index
    %c0_18 = arith.constant 0 : index
    %20 = vector.load %arg7[%c0_17, %c0_18] : memref<8x128xf32, #tpu.memory_space<vmem>>, vector<8x128xf32>
    tpu.vector_store %arg7[%c0_17, %c0_18], %19 {strides = array<i32>} : memref<8x128xf32, #tpu.memory_space<vmem>>, vector<8x128xf32>,
    return
  }
}

</mosaic_0001>

<bundles_post_ra>
// kernel: _forward_impl.1
= control target key start
LH: loop header
LB: loop body
LE: loop exit
PB: predicated region body
PF: predicated region fallthrough
CT: control target
= control target key end

     0   :  { %12 = vsyncpa [#allocation3], 0  ;;  %s356_s0 = inlined_call_operand.vmem [shape: f32[8,128], index: 0, kind: input, shape index: {}]   ;;  %s357_s1 = inlined_call_operand.hbm [shape: f32[128,128], index: 1, kind: input, shape index: {}]   ;;  %s358_s2 = inlined_call_operand.vmem [shape: f32[1,128], index: 2, kind: input, shape index: {}]   ;;  %s359_s3 = inlined_call_operand.hbm [shape: f32[128,128], index: 3, kind: input, shape index: {}]   ;;  %s360_s4 = inlined_call_operand.vmem [shape: f32[1,128], index: 4, kind: input, shape index: {}]   ;;  %s361_s5 = inlined_call_operand.hbm [shape: f32[128,128], index: 5, kind: input, shape index: {}]   ;;  %s362_s6 = inlined_call_operand.vmem [shape: f32[1,128], index: 6, kind: input, shape index: {}]   ;;  %s363_s7 = inlined_call_operand.vmem [shape: f32[8,128], index: 7, kind: output, shape index: {}]  }
   0x1   :  { %13 = vsyncpa [#allocation5], 0  ;;  %s35_s26 = sshll.u32 %s359_s3, 4  ;;  %s287_s27 = smov [#allocation4]   ;;  %s36_s26 = int_to_ptr.hbm [resolvable:$true] %s35_s26 }
   0x2   :  { %s37_s28 = sshll.u32 %s287_s27, 4  ;;  %s20_s8 = sshll.u32 %s357_s1, 4  ;;  %s38_s28 = int_to_ptr.vmem [resolvable:$true] %s37_s28  ;;  %s21_s8 = int_to_ptr.hbm [resolvable:$true] %s20_s8 }
   0x3   :  { %s288_s9 = smov 128   ;;  %s289_s10 = smov 8  }
   0x4   :  { %43 = dma.hbm_to_vmem [thread:$0]  %s36_s26, 2048, %s38_s28, [#allocation5], %s288_s9, %s288_s9, %s289_s10  }
   0x5   :  { %s290_s11 = smov [#allocation2]   ;;  %s50_s15 = sshll.u32 %s361_s5, 4  ;;  %s51_s15 = int_to_ptr.hbm [resolvable:$true] %s50_s15 }
   0x6   :  { %s22_s12 = sshll.u32 %s290_s11, 4  ;;  %s291_s3 = smov [#allocation6]   ;;  %s23_s12 = int_to_ptr.vmem [resolvable:$true] %s22_s12 }
   0x7   :  { %28 = dma.hbm_to_vmem [thread:$0]  %s21_s8, 2048, %s23_s12, [#allocation3], %s288_s9, %s288_s9, %s289_s10  }
   0x8   :  { %s52_s16 = sshll.u32 %s291_s3, 4  ;;  %s53_s16 = int_to_ptr.vmem [resolvable:$true] %s52_s16 }
   0x9   :  { %58 = dma.hbm_to_vmem [thread:$0]  %s51_s15, 2048, %s53_s16, [#allocation5], %s288_s9, %s288_s9, %s289_s10  }
   0xa   :  { %283 = dma.done.wait [#allocation3], 2048  }
   0xb   :  { %284 = vsyncadd [#allocation3], 4294965248 }
   0xc   :  { %285 = dma.done.wait [#allocation5], 4096  }
   0xd   :  { %286 = vsyncadd [#allocation5], 4294963200  ;;  %v89_v0 = vld [vmem:[#allocation2 + $0x78] sm:$0xff]  ;;  %v88_v1 = vld [vmem:[#allocation2 + $0x70] sm:$0xff] }
   0xe   :  { %94 = vmatpush.msra.mxu0 %v89_v0  ;;  %v87_v2 = vld [vmem:[#allocation2 + $0x68] sm:$0xff]  ;;  %v86_v3 = vld [vmem:[#allocation2 + $0x60] sm:$0xff]  ;;  %v130_v4 = vld [vmem:[#allocation4 + $0x78] sm:$0xff] }
   0xf   :  { %v85_v5 = vld [vmem:[#allocation2 + $0x58] sm:$0xff]  ;;  %135 = vmatpush.msra.mxu1 %v130_v4  ;;  %v129_v6 = vld [vmem:[#allocation4 + $0x70] sm:$0xff]  ;;  %v128_v7 = vld [vmem:[#allocation4 + $0x68] sm:$0xff] }
  0x10   :  { %95 = vmatpush.msra.mxu0 %v88_v1  ;;  %v84_v8 = vld [vmem:[#allocation2 + $0x50] sm:$0xff]  ;;  %v127_v9 = vld [vmem:[#allocation4 + $0x60] sm:$0xff]  ;;  %v83_v10 = vld [vmem:[#allocation2 + $0x48] sm:$0xff] }
  0x11   :  { %136 = vmatpush.msra.mxu1 %v129_v6  ;;  %v126_v11 = vld [vmem:[#allocation4 + $0x58] sm:$0xff]  ;;  %v82_v12 = vld [vmem:[#allocation2 + $0x40] sm:$0xff]  ;;  %v125_v13 = vld [vmem:[#allocation4 + $0x50] sm:$0xff] }
  0x12   :  { %96 = vmatpush.msra.mxu0 %v87_v2  ;;  %v81_v14 = vld [vmem:[#allocation2 + $0x38] sm:$0xff]  ;;  %v124_v15 = vld [vmem:[#allocation4 + $0x48] sm:$0xff]  ;;  %v80_v16 = vld [vmem:[#allocation2 + $0x30] sm:$0xff] }
  0x13   :  { %137 = vmatpush.msra.mxu1 %v128_v7  ;;  %v123_v17 = vld [vmem:[#allocation4 + $0x40] sm:$0xff]  ;;  %v79_v18 = vld [vmem:[#allocation2 + $0x28] sm:$0xff]  ;;  %v122_v19 = vld [vmem:[#allocation4 + $0x38] sm:$0xff] }
  0x14   :  { %97 = vmatpush.msra.mxu0 %v86_v3  ;;  %v78_v20 = vld [vmem:[#allocation2 + $0x20] sm:$0xff]  ;;  %v121_v21 = vld [vmem:[#allocation4 + $0x30] sm:$0xff]  ;;  %v77_v22 = vld [vmem:[#allocation2 + $0x18] sm:$0xff] }
  0x15   :  { %138 = vmatpush.msra.mxu1 %v127_v9  ;;  %v120_v23 = vld [vmem:[#allocation4 + $0x28] sm:$0xff]  ;;  %v76_v24 = vld [vmem:[#allocation2 + $0x10] sm:$0xff]  ;;  %v119_v25 = vld [vmem:[#allocation4 + $0x20] sm:$0xff] }
  0x16   :  { %98 = vmatpush.msra.mxu0 %v85_v5  ;;  %v75_v26 = vld [vmem:[#allocation2 + $0x8] sm:$0xff]  ;;  %v118_v27 = vld [vmem:[#allocation4 + $0x18] sm:$0xff]  ;;  %v74_v28 = vld [vmem:[#allocation2] sm:$0xff] }
  0x17   :  { %139 = vmatpush.msra.mxu1 %v126_v11  ;;  %v73_v29 = vld [vmem:[%s356_s0] sm:$0xff]  ;;  %v117_v30 = vld [vmem:[#allocation4 + $0x10] sm:$0xff]  ;;  %v116_v31 = vld [vmem:[#allocation4 + $0x8] sm:$0xff] }
  0x18   :  { %99 = vmatpush.msra.mxu0 %v84_v8  ;;  %v115_v32 = vld [vmem:[#allocation4] sm:$0xff]  ;;  %v171_v33 = vld [vmem:[#allocation6 + $0x78] sm:$0xff]  ;;  %v170_v34 = vld [vmem:[#allocation6 + $0x70] sm:$0xff] }
  0x19   :  { %140 = vmatpush.msra.mxu1 %v125_v13  ;;  %176 = vmatpush.msra.mxu2 %v171_v33  ;;  %v169_v35 = vld [vmem:[#allocation6 + $0x68] sm:$0xff]  ;;  %v168_v36 = vld [vmem:[#allocation6 + $0x60] sm:$0xff]  ;;  %v167_v37 = vld [vmem:[#allocation6 + $0x58] sm:$0xff] }
  0x1a   :  { %100 = vmatpush.msra.mxu0 %v83_v10  ;;  %v166_v38 = vld [vmem:[#allocation6 + $0x50] sm:$0xff]  ;;  %v165_v39 = vld [vmem:[#allocation6 + $0x48] sm:$0xff]  ;;  %v164_v40 = vld [vmem:[#allocation6 + $0x40] sm:$0xff] }
  0x1b   :  { %141 = vmatpush.msra.mxu1 %v124_v15  ;;  %177 = vmatpush.msra.mxu2 %v170_v34  ;;  %v163_v41 = vld [vmem:[#allocation6 + $0x38] sm:$0xff]  ;;  %v162_v42 = vld [vmem:[#allocation6 + $0x30] sm:$0xff]  ;;  %v161_v43 = vld [vmem:[#allocation6 + $0x28] sm:$0xff] }
  0x1c   :  { %101 = vmatpush.msra.mxu0 %v82_v12  ;;  %v160_v44 = vld [vmem:[#allocation6 + $0x20] sm:$0xff]  ;;  %v159_v45 = vld [vmem:[#allocation6 + $0x18] sm:$0xff]  ;;  %v158_v50 = vld [vmem:[#allocation6 + $0x10] sm:$0xff] }
  0x1d   :  { %142 = vmatpush.msra.mxu1 %v123_v17  ;;  %178 = vmatpush.msra.mxu2 %v169_v35  ;;  %v208_v46 = vld [vmem:[%s358_s2] ss:$0 sm:$0xff]  ;;  %v157_v51 = vld [vmem:[#allocation6 + $0x8] sm:$0xff] }
  0x1e   :  { %102 = vmatpush.msra.mxu0 %v81_v14  ;;  %v156_v52 = vld [vmem:[#allocation6] sm:$0xff] }
  0x1f   :  { %143 = vmatpush.msra.mxu1 %v122_v19  ;;  %179 = vmatpush.msra.mxu2 %v168_v36  ;;  %v209_v53 = vld [vmem:[%s360_s4] ss:$0 sm:$0xff] }
  0x20   :  { %103 = vmatpush.msra.mxu0 %v80_v16  ;;  %v210_v57 = vld [vmem:[%s362_s6] ss:$0 sm:$0xff] }
  0x21   :  { %144 = vmatpush.msra.mxu1 %v121_v21  ;;  %180 = vmatpush.msra.mxu2 %v167_v37 }
  0x22   :  { %104 = vmatpush.msra.mxu0 %v79_v18 }
  0x23   :  { %145 = vmatpush.msra.mxu1 %v120_v23  ;;  %181 = vmatpush.msra.mxu2 %v166_v38 }
  0x24   :  { %105 = vmatpush.msra.mxu0 %v78_v20 }
  0x25   :  { %146 = vmatpush.msra.mxu1 %v119_v25  ;;  %182 = vmatpush.msra.mxu2 %v165_v39 }
  0x26   :  { %106 = vmatpush.msra.mxu0 %v77_v22 }
  0x27   :  { %147 = vmatpush.msra.mxu1 %v118_v27  ;;  %183 = vmatpush.msra.mxu2 %v164_v40 }
  0x28   :  { %107 = vmatpush.msra.mxu0 %v76_v24 }
  0x29   :  { %148 = vmatpush.msra.mxu1 %v117_v30  ;;  %184 = vmatpush.msra.mxu2 %v163_v41 }
  0x2a   :  { %108 = vmatpush.msra.mxu0 %v75_v26 }
  0x2b   :  { %149 = vmatpush.msra.mxu1 %v116_v31  ;;  %185 = vmatpush.msra.mxu2 %v162_v42 }
  0x2c   :  { %109 = vmatpush.msra.mxu0 %v74_v28 }
  0x2d   :  { %110 = vmatmul.f32.vlgmr.msra.gmra.mxu0 %v73_v29  ;;  %150 = vmatpush.msra.mxu1 %v115_v32 }
  0x2e   :  { %186 = vmatpush.msra.mxu2 %v161_v43 }
  0x30   :  { %187 = vmatpush.msra.mxu2 %v160_v44 }
  0x32   :  { %188 = vmatpush.msra.mxu2 %v159_v45 }
  0x34   :  { %189 = vmatpush.msra.mxu2 %v158_v50 }
  0x36   :  { %190 = vmatpush.msra.mxu2 %v157_v51 }
  0x38   :  { %191 = vmatpush.msra.mxu2 %v156_v52 }
  0xaa   :  { %v111_v47 = vpop.f32.mrf.mxu0 }
  0xab   :  { %v112_v48 = vadd.f32 %v208_v46, %v111_v47 }
  0xad   :  { %v114_v49 = vmax.f32 %v112_v48, 0.0 }
  0xaf   :  { %151 = vmatmul.f32.vlgmr.msra.gmra.mxu1 %v114_v49 }
 0x12c   :  { %v152_v54 = vpop.f32.mrf.mxu1 }
 0x12d   :  { %v153_v55 = vadd.f32 %v209_v53, %v152_v54 }
 0x12f   :  { %v155_v56 = vmax.f32 %v153_v55, 0.0 }
 0x131   :  { %192 = vmatmul.f32.vlgmr.msra.gmra.mxu2 %v155_v56 }
 0x1b4   :  { %v193_v58 = vpop.f32.mrf.mxu2 }
 0x1b5   :  { %v194_v59 = vadd.f32 %v210_v57, %v193_v58 }
 0x1b7   :  { %196 = vst [vmem:[%s363_s7] sm:$0xff] %v194_v59 }
 0x1b8   :  { %201 = vsyncpa [#allocation3], 1 }
 0x1b9   :  { %202 = vsyncpa [#allocation5], 1 }

</bundles_post_ra>
